<compile_context>
chip_gen: v7x
topology: tpu7x:2x2x1
jax: 0.10.0
libtpu: 0.0.40
codegen_flags: <defaults>
</compile_context>

<pallas_src>
import math

import jax
import jax.numpy as jnp
from jax.experimental import pallas as pl
from jax.experimental.pallas import tpu as pltpu


# ------------------------------ helpers -------------------------------------

def _round_up(a, m):
    return ((a + m - 1) // m) * m


def _vmem_estimate(t_b, t_k, t_out, w_bytes, x_bytes, out_bytes, training):
    n_w = 2 if training else 1      # W_mu (+ W_sigma)
    n_x = 2 if training else 1      # x (+ x*eps_in)
    weights = n_w * 2 * t_k * t_out * w_bytes      # double-buffered weight tiles
    xs = n_x * 2 * t_b * t_k * x_bytes             # double-buffered x tiles
    outs = 2 * t_b * t_out * out_bytes             # double-buffered output tile
    bias = 2 * 2 * t_out * 4                       # tiny bias/eps stack
    acc = n_w * t_b * t_out * 4                    # f32 accumulator scratch
    return weights + xs + outs + bias + acc


def _pick_tiles(t_b, in_p, out_p, w_bytes, x_bytes, out_bytes, training, budget):
    """VMEM-budget-aware (t_out, t_k) choice. Dims are multiples of 128."""
    out_cands = sorted({c for c in (out_p, out_p // 2, 1024, 512, 256, 128)
                        if 128 <= c <= out_p and out_p % c == 0 and c % 128 == 0},
                       reverse=True)
    k_cands = sorted({c for c in (in_p, in_p // 2, 4096, 2048, 1024, 512, 256, 128)
                      if 128 <= c <= in_p and in_p % c == 0 and c % 128 == 0},
                     reverse=True)
    best = None
    for t_out in out_cands:
        n_out = out_p // t_out
        for t_k in k_cands:
            if _vmem_estimate(t_b, t_k, t_out, w_bytes, x_bytes, out_bytes,
                              training) > budget:
                continue
            n_k = in_p // t_k
            # Prefer: (a) >=2 out tiles so v7x's two TCs both get work,
            #         (b) fewest grid steps (~0.35us/step overhead),
            #         (c) largest K tile (long contiguous weight DMAs).
            multi_tc = (n_out >= 2) or (out_p == 128)
            score = (multi_tc, -(n_out * n_k), t_k)
            if best is None or score > best[0]:
                best = (score, t_out, t_k)
    if best is None:
        return 128, 128
    return best[1], best[2]


# ----------------------------- Pallas kernels -------------------------------

def _noisy_train_kernel(x_ref, xn_ref, wmu_ref, wsig_ref, bstack_ref, o_ref,
                        acc_mu, acc_sig):
    k = pl.program_id(2)

    @pl.when(k == 0)
    def _():
        acc_mu[...] = jnp.zeros_like(acc_mu)
        acc_sig[...] = jnp.zeros_like(acc_sig)

    # Pre-transposed weights ([in, out]) -> plain (1,0) contraction on the MXU.
    acc_mu[...] += jnp.dot(x_ref[...], wmu_ref[...],
                           preferred_element_type=jnp.float32)
    acc_sig[...] += jnp.dot(xn_ref[...], wsig_ref[...],
                            preferred_element_type=jnp.float32)

    @pl.when(k == pl.num_programs(2) - 1)
    def _():
        bst = bstack_ref[...]                 # [2, t_out] f32
        b_noisy = bst[0:1, :]                 # b_mu + b_sigma * eps_out (precomputed)
        eps_out = bst[1:2, :]
        o_ref[...] = (acc_mu[...] + eps_out * acc_sig[...]
                      + b_noisy).astype(o_ref.dtype)


def _noisy_eval_kernel(x_ref, wmu_ref, bmu_ref, o_ref, acc):
    k = pl.program_id(2)

    @pl.when(k == 0)
    def _():
        acc[...] = jnp.zeros_like(acc)

    acc[...] += jnp.dot(x_ref[...], wmu_ref[...],
                        preferred_element_type=jnp.float32)

    @pl.when(k == pl.num_programs(2) - 1)
    def _():
        o_ref[...] = (acc[...] + bmu_ref[...]).astype(o_ref.dtype)


# ----------------------- one-time parameter preparation ---------------------

def prepare_noisy_linear(params, weight_dtype=jnp.bfloat16):
    """Pad / transpose / cast the weights ONCE so the forward pass only pads x."""
    out_f, in_f = params["weight_mu"].shape
    in_p = _round_up(in_f, 128)
    out_p = _round_up(out_f, 128)

    def pad_w(a):  # [out, in] -> zero-padded [out_p, in_p]
        return jnp.pad(a, ((0, out_p - out_f), (0, in_p - in_f)))

    # Pre-transposed [in_p, out_p] streaming weights (zero padding survives cast).
    wmu_t = pad_w(params["weight_mu"]).T.astype(weight_dtype)
    wsig_t = pad_w(params["weight_sigma"]).T.astype(weight_dtype)

    eps_in = jnp.pad(params["eps_in"], (0, in_p - in_f)).reshape(1, in_p)
    eps_out = jnp.pad(params["eps_out"], (0, out_p - out_f))
    b_mu = jnp.pad(params["bias_mu"], (0, out_p - out_f))
    b_sig = jnp.pad(params["bias_sigma"], (0, out_p - out_f))
    b_noisy = b_mu + b_sig * eps_out
    bstack = jnp.stack([b_noisy, eps_out]).astype(jnp.float32)   # [2, out_p]
    bmu_row = b_mu.reshape(1, out_p).astype(jnp.float32)

    return dict(wmu_t=wmu_t, wsig_t=wsig_t, eps_in=eps_in.astype(jnp.float32),
                bstack=bstack, bmu=bmu_row,
                in_features=in_f, out_features=out_f,
                in_p=in_p, out_p=out_p, weight_dtype=weight_dtype)


# --------------------------------- forward ----------------------------------

def noisy_linear(x, prep, training=True, *, vmem_budget_bytes=28 << 20,
                 force_pallas=False):
    """NoisyLinear forward. x: [B, in_features]. prep: prepare_noisy_linear()."""
    B, in_f = x.shape
    assert in_f == prep["in_features"]
    out_f = prep["out_features"]
    in_p, out_p = prep["in_p"], prep["out_p"]
    w_dtype = prep["weight_dtype"]
    w_bytes = jnp.dtype(w_dtype).itemsize
    out_bytes = jnp.dtype(x.dtype).itemsize

    # Tiny-layer fast path: below ~1 MiB of weights, pallas_call fixed overhead
    # and pad/slice round-trips dominate; let XLA fuse the matmul with neighbors.
    weight_bytes = (2 if training else 1) * in_p * out_p * w_bytes
    if not force_pallas and weight_bytes < (1 << 20):
        xw = x.astype(w_dtype)
        y = jnp.dot(xw, prep["wmu_t"][:in_f, :out_f],
                    preferred_element_type=jnp.float32)
        if training:
            xn = (x * prep["eps_in"][:, :in_f]).astype(w_dtype)
            y = y + prep["bstack"][1, :out_f] * jnp.dot(
                xn, prep["wsig_t"][:in_f, :out_f],
                preferred_element_type=jnp.float32)
            y = y + prep["bstack"][0, :out_f]
        else:
            y = y + prep["bmu"][0, :out_f]
        return y.astype(x.dtype)

    # --- Pallas path -------------------------------------------------------
    B_p8 = _round_up(B, 8)
    t_b = min(B_p8, 128)
    B_p = _round_up(B, t_b)
    x_p = jnp.pad(x, ((0, B_p - B), (0, in_p - in_f)))

    t_out, t_k = _pick_tiles(t_b, in_p, out_p, w_bytes, w_bytes, out_bytes,
                             training, vmem_budget_bytes)
    grid = (B_p // t_b, out_p // t_out, in_p // t_k)

    est = _vmem_estimate(t_b, t_k, t_out, w_bytes, w_bytes, out_bytes, training)
    cparams = pltpu.CompilerParams(
        dimension_semantics=("parallel", "parallel", "arbitrary"),
        vmem_limit_bytes=int(min(64 << 20, max(32 << 20, 2 * est))))

    cost = pl.CostEstimate(
        flops=(4 if training else 2) * B * in_f * out_f,
        transcendentals=0,
        bytes_accessed=((2 if training else 1) * in_p * out_p * w_bytes
                        + (2 if training else 1) * B_p * in_p * w_bytes
                        + B_p * out_p * out_bytes))

    if training:
        xw = x_p.astype(w_dtype)
        xn = (x_p * prep["eps_in"]).astype(w_dtype)   # x*eps_in computed once per call
        y_pad = pl.pallas_call(
            _noisy_train_kernel,
            out_shape=jax.ShapeDtypeStruct((B_p, out_p), x.dtype),
            grid_spec=pltpu.PrefetchScalarGridSpec(
                num_scalar_prefetch=0,
                grid=grid,
                in_specs=[
                    pl.BlockSpec((t_b, t_k), lambda b, j, k: (b, k)),      # x
                    pl.BlockSpec((t_b, t_k), lambda b, j, k: (b, k)),      # x*eps_in
                    pl.BlockSpec((t_k, t_out), lambda b, j, k: (k, j)),    # W_mu^T
                    pl.BlockSpec((t_k, t_out), lambda b, j, k: (k, j)),    # W_sigma^T
                    pl.BlockSpec((2, t_out), lambda b, j, k: (0, j)),      # [b_noisy;eps_out]
                ],
                out_specs=pl.BlockSpec((t_b, t_out), lambda b, j, k: (b, j)),
                scratch_shapes=[pltpu.VMEM((t_b, t_out), jnp.float32),
                                pltpu.VMEM((t_b, t_out), jnp.float32)],
            ),
            compiler_params=cparams,
            cost_estimate=cost,
        )(xw, xn, prep["wmu_t"], prep["wsig_t"], prep["bstack"])
    else:
        xw = x_p.astype(w_dtype)
        y_pad = pl.pallas_call(
            _noisy_eval_kernel,
            out_shape=jax.ShapeDtypeStruct((B_p, out_p), x.dtype),
            grid_spec=pltpu.PrefetchScalarGridSpec(
                num_scalar_prefetch=0,
                grid=grid,
                in_specs=[
                    pl.BlockSpec((t_b, t_k), lambda b, j, k: (b, k)),      # x
                    pl.BlockSpec((t_k, t_out), lambda b, j, k: (k, j)),    # W_mu^T
                    pl.BlockSpec((1, t_out), lambda b, j, k: (0, j)),      # b_mu
                ],
                out_specs=pl.BlockSpec((t_b, t_out), lambda b, j, k: (b, j)),
                scratch_shapes=[pltpu.VMEM((t_b, t_out), jnp.float32)],
            ),
            compiler_params=cparams,
            cost_estimate=cost,
        )(xw, prep["wmu_t"], prep["bmu"])

    return y_pad[:B, :out_f]


# -------------------- deterministic parameter construction ------------------

def _scale_noise(key, size):
    x = jax.random.normal(key, (size,), dtype=jnp.float32)
    return jnp.sign(x) * jnp.sqrt(jnp.abs(x))


def init_noisy_linear(key, in_features, out_features, std_init=0.5):
    k_wmu, k_bmu, k_ein, k_eout = jax.random.split(key, 4)
    mu_range = 1.0 / math.sqrt(in_features)

    weight_mu = jax.random.uniform(k_wmu, (out_features, in_features),
                                   minval=-mu_range, maxval=mu_range,
                                   dtype=jnp.float32)
    weight_sigma = jnp.full((out_features, in_features),
                            std_init / math.sqrt(in_features), jnp.float32)
    bias_mu = jax.random.uniform(k_bmu, (out_features,),
                                 minval=-mu_range, maxval=mu_range,
                                 dtype=jnp.float32)
    bias_sigma = jnp.full((out_features,),
                          std_init / math.sqrt(out_features), jnp.float32)

    eps_in = _scale_noise(k_ein, in_features)
    eps_out = _scale_noise(k_eout, out_features)
    # Dense buffers kept only for the pure-JAX reference; kernel uses factored eps.
    weight_epsilon = jnp.outer(eps_out, eps_in)
    bias_epsilon = eps_out

    return dict(weight_mu=weight_mu, weight_sigma=weight_sigma,
                weight_epsilon=weight_epsilon, bias_mu=bias_mu,
                bias_sigma=bias_sigma, bias_epsilon=bias_epsilon,
                eps_in=eps_in, eps_out=eps_out)


# --------------------------------- main --------------------------------------

if __name__ == "__main__":
    key = jax.random.PRNGKey(0)
    k_param, k_x = jax.random.split(key)

    B, IN_F, OUT_F = 8, 32, 64
    params = init_noisy_linear(k_param, IN_F, OUT_F, std_init=0.5)
    x = jax.random.normal(k_x, (B, IN_F), dtype=jnp.float32)

    # Pure-JAX reference (dense noisy weight, exactly the PyTorch formula).
    w_noisy = params["weight_mu"] + params["weight_sigma"] * params["weight_epsilon"]
    b_noisy = params["bias_mu"] + params["bias_sigma"] * params["bias_epsilon"]
    ref_train = x @ w_noisy.T + b_noisy
    ref_eval = x @ params["weight_mu"].T + params["bias_mu"]

    # f32 streaming path: tight numerical check of the kernel itself.
    prep_f32 = prepare_noisy_linear(params, weight_dtype=jnp.float32)
    y_train = jax.block_until_ready(
        noisy_linear(x, prep_f32, training=True, force_pallas=True))
    y_eval = jax.block_until_ready(
        noisy_linear(x, prep_f32, training=False, force_pallas=True))

    # bf16 streaming path (production default): loose check vs f32 reference.
    prep_bf16 = prepare_noisy_linear(params, weight_dtype=jnp.bfloat16)
    y_train_bf16 = jax.block_until_ready(
        noisy_linear(x, prep_bf16, training=True, force_pallas=True))

    assert y_train.shape == (B, OUT_F) and y_eval.shape == (B, OUT_F)
    assert jnp.allclose(y_train, ref_train, atol=1e-4, rtol=1e-4)
    assert jnp.allclose(y_eval, ref_eval, atol=1e-4, rtol=1e-4)
    assert jnp.allclose(y_train_bf16, ref_train, atol=5e-2, rtol=5e-2)

    print("KERNEL_OK")
</pallas_src>

<mosaic_0001>
module attributes {stable_mosaic.version = 11 : i64} {
  func.func @_noisy_train_kernel(%arg0: i32, %arg1: i32, %arg2: i32, %arg3: memref<8x128xf32, #tpu.memory_space<vmem>>, %arg4: memref<8x128xf32, #tpu.memory_space<vmem>>, %arg5: memref<128x128xf32, #tpu.memory_space<vmem>>, %arg6: memref<128x128xf32, #tpu.memory_space<vmem>>, %arg7: memref<2x128xf32, #tpu.memory_space<vmem>>, %arg8: memref<8x128xf32, #tpu.memory_space<vmem>>, %arg9: memref<8x128xf32, #tpu.memory_space<vmem>>, %arg10: memref<8x128xf32, #tpu.memory_space<vmem>>) attributes {dimension_semantics = [#tpu.dimension_semantics<parallel>, #tpu.dimension_semantics<parallel>, #tpu.dimension_semantics<arbitrary>], iteration_bounds = array<i64: 1, 1, 1>, scalar_prefetch = 0 : i64, scratch_operands = 2 : i64, tpu.core_type = #tpu.core_type<tc>, window_params = [{transform_indices = @transform_0, window_bounds = array<i64: 8, 128>}, {transform_indices = @transform_1, window_bounds = array<i64: 8, 128>}, {transform_indices = @transform_2, window_bounds = array<i64: 128, 128>}, {transform_indices = @transform_3, window_bounds = array<i64: 128, 128>}, {transform_indices = @transform_4, window_bounds = array<i64: 2, 128>}, {transform_indices = @transform_5, window_bounds = array<i64: 8, 128>}]} {
    %c0_i32 = arith.constant 0 : i32
    %0 = arith.cmpi eq, %arg2, %c0_i32 : i32
    %1 = arith.extui %0 : i1 to i32
    %c0_i32_0 = arith.constant 0 : i32
    %2 = arith.cmpi ne, %1, %c0_i32_0 : i32
    scf.if %2 {
      %cst_19 = arith.constant 0.000000e+00 : f32
      %18 = vector.broadcast %cst_19 : f32 to vector<8x128xf32>
      %c0_20 = arith.constant 0 : index
      %c0_21 = arith.constant 0 : index
      %19 = vector.load %arg9[%c0_20, %c0_21] : memref<8x128xf32, #tpu.memory_space<vmem>>, vector<8x128xf32>
      tpu.vector_store %arg9[%c0_20, %c0_21], %18 {strides = array<i32>} : memref<8x128xf32, #tpu.memory_space<vmem>>, vector<8x128xf32>,
      %cst_22 = arith.constant 0.000000e+00 : f32
      %20 = vector.broadcast %cst_22 : f32 to vector<8x128xf32>
      %c0_23 = arith.constant 0 : index
      %c0_24 = arith.constant 0 : index
      %21 = vector.load %arg10[%c0_23, %c0_24] : memref<8x128xf32, #tpu.memory_space<vmem>>, vector<8x128xf32>
      tpu.vector_store %arg10[%c0_23, %c0_24], %20 {strides = array<i32>} : memref<8x128xf32, #tpu.memory_space<vmem>>, vector<8x128xf32>,
    } else {
    }
    %c0 = arith.constant 0 : index
    %c0_1 = arith.constant 0 : index
    %3 = vector.load %arg9[%c0, %c0_1] : memref<8x128xf32, #tpu.memory_space<vmem>>, vector<8x128xf32>
    %c0_2 = arith.constant 0 : index
    %c0_3 = arith.constant 0 : index
    %4 = vector.load %arg3[%c0_2, %c0_3] : memref<8x128xf32, #tpu.memory_space<vmem>>, vector<8x128xf32>
    %c0_4 = arith.constant 0 : index
    %c0_5 = arith.constant 0 : index
    %5 = vector.load %arg5[%c0_4, %c0_5] : memref<128x128xf32, #tpu.memory_space<vmem>>, vector<128x128xf32>
    %cst = arith.constant dense<0.000000e+00> : vector<8x128xf32>
    %6 = tpu.matmul %4, %5, %cst {dimension_numbers = #tpu.dot_dimension_numbers<[1], [0], [0], [1], [0, 0, 1, 1], [], []>} : vector<8x128xf32>, vector<128x128xf32>, vector<8x128xf32> -> vector<8x128xf32>
    %7 = arith.addf %3, %6 : vector<8x128xf32>
    %c0_6 = arith.constant 0 : index
    %c0_7 = arith.constant 0 : index
    %8 = vector.load %arg9[%c0_6, %c0_7] : memref<8x128xf32, #tpu.memory_space<vmem>>, vector<8x128xf32>
    tpu.vector_store %arg9[%c0_6, %c0_7], %7 {strides = array<i32>} : memref<8x128xf32, #tpu.memory_space<vmem>>, vector<8x128xf32>,
    %c0_8 = arith.constant 0 : index
    %c0_9 = arith.constant 0 : index
    %9 = vector.load %arg10[%c0_8, %c0_9] : memref<8x128xf32, #tpu.memory_space<vmem>>, vector<8x128xf32>
    %c0_10 = arith.constant 0 : index
    %c0_11 = arith.constant 0 : index
    %10 = vector.load %arg4[%c0_10, %c0_11] : memref<8x128xf32, #tpu.memory_space<vmem>>, vector<8x128xf32>
    %c0_12 = arith.constant 0 : index
    %c0_13 = arith.constant 0 : index
    %11 = vector.load %arg6[%c0_12, %c0_13] : memref<128x128xf32, #tpu.memory_space<vmem>>, vector<128x128xf32>
    %cst_14 = arith.constant dense<0.000000e+00> : vector<8x128xf32>
    %12 = tpu.matmul %10, %11, %cst_14 {dimension_numbers = #tpu.dot_dimension_numbers<[1], [0], [0], [1], [0, 0, 1, 1], [], []>} : vector<8x128xf32>, vector<128x128xf32>, vector<8x128xf32> -> vector<8x128xf32>
    %13 = arith.addf %9, %12 : vector<8x128xf32>
    %c0_15 = arith.constant 0 : index
    %c0_16 = arith.constant 0 : index
    %14 = vector.load %arg10[%c0_15, %c0_16] : memref<8x128xf32, #tpu.memory_space<vmem>>, vector<8x128xf32>
    tpu.vector_store %arg10[%c0_15, %c0_16], %13 {strides = array<i32>} : memref<8x128xf32, #tpu.memory_space<vmem>>, vector<8x128xf32>,
    %c0_i32_17 = arith.constant 0 : i32
    %15 = arith.cmpi eq, %arg2, %c0_i32_17 : i32
    %16 = arith.extui %15 : i1 to i32
    %c0_i32_18 = arith.constant 0 : i32
    %17 = arith.cmpi ne, %16, %c0_i32_18 : i32
    scf.if %17 {
      %c0_19 = arith.constant 0 : index
      %c0_20 = arith.constant 0 : index
      %18 = vector.load %arg7[%c0_19, %c0_20] : memref<2x128xf32, #tpu.memory_space<vmem>>, vector<2x128xf32>
      %19 = vector.extract_strided_slice %18 {offsets = [0, 0], sizes = [1, 128], strides = [1, 1]} : vector<2x128xf32> to vector<1x128xf32>
      %20 = vector.extract_strided_slice %18 {offsets = [1, 0], sizes = [1, 128], strides = [1, 1]} : vector<2x128xf32> to vector<1x128xf32>
      %c0_21 = arith.constant 0 : index
      %c0_22 = arith.constant 0 : index
      %21 = vector.load %arg9[%c0_21, %c0_22] : memref<8x128xf32, #tpu.memory_space<vmem>>, vector<8x128xf32>
      %c0_23 = arith.constant 0 : index
      %c0_24 = arith.constant 0 : index
      %22 = vector.load %arg10[%c0_23, %c0_24] : memref<8x128xf32, #tpu.memory_space<vmem>>, vector<8x128xf32>
      %23 = vector.broadcast %20 : vector<1x128xf32> to vector<8x128xf32>
      %24 = arith.mulf %23, %22 : vector<8x128xf32>
      %25 = arith.addf %21, %24 : vector<8x128xf32>
      %26 = vector.broadcast %19 : vector<1x128xf32> to vector<8x128xf32>
      %27 = arith.addf %25, %26 : vector<8x128xf32>
      %c0_25 = arith.constant 0 : index
      %c0_26 = arith.constant 0 : index
      %28 = vector.load %arg8[%c0_25, %c0_26] : memref<8x128xf32, #tpu.memory_space<vmem>>, vector<8x128xf32>
      tpu.vector_store %arg8[%c0_25, %c0_26], %27 {strides = array<i32>} : memref<8x128xf32, #tpu.memory_space<vmem>>, vector<8x128xf32>,
    } else {
    }
    return
  }
  func.func @transform_0(%arg0: i32, %arg1: i32, %arg2: i32) -> (i32, i32) {
    %c0_i32 = arith.constant 0 : i32
    return %arg0, %arg2 : i32, i32
  }
  func.func @transform_1(%arg0: i32, %arg1: i32, %arg2: i32) -> (i32, i32) {
    %c0_i32 = arith.constant 0 : i32
    return %arg0, %arg2 : i32, i32
  }
  func.func @transform_2(%arg0: i32, %arg1: i32, %arg2: i32) -> (i32, i32) {
    %c0_i32 = arith.constant 0 : i32
    return %arg2, %arg1 : i32, i32
  }
  func.func @transform_3(%arg0: i32, %arg1: i32, %arg2: i32) -> (i32, i32) {
    %c0_i32 = arith.constant 0 : i32
    return %arg2, %arg1 : i32, i32
  }
  func.func @transform_4(%arg0: i32, %arg1: i32, %arg2: i32) -> (i32, i32) {
    %c0_i32 = arith.constant 0 : i32
    %c0_i32_0 = arith.constant 0 : i32
    return %c0_i32, %arg1 : i32, i32
  }
  func.func @transform_5(%arg0: i32, %arg1: i32, %arg2: i32) -> (i32, i32) {
    %c0_i32 = arith.constant 0 : i32
    return %arg0, %arg1 : i32, i32
  }
}

</mosaic_0001>

<bundles_post_ra>
// kernel: tpu_custom_call.1
= control target key start
LH: loop header
LB: loop body
LE: loop exit
PB: predicated region body
PF: predicated region fallthrough
CT: control target
= control target key end

     0   :  { %10 = vsyncpa [#allocation5], 0  ;;  %s692_s0 = inlined_call_operand.hbm [shape: f32[8,128], index: 0, kind: input, shape index: {}]   ;;  %s693_s1 = inlined_call_operand.hbm [shape: f32[8,128], index: 1, kind: input, shape index: {}]   ;;  %s694_s2 = inlined_call_operand.hbm [shape: f32[128,128], index: 2, kind: input, shape index: {}]   ;;  %s695_s3 = inlined_call_operand.hbm [shape: f32[128,128], index: 3, kind: input, shape index: {}]   ;;  %s696_s4 = inlined_call_operand.vmem [shape: f32[2,128], index: 4, kind: input, shape index: {}]   ;;  %s697_s5 = inlined_call_operand.hbm [shape: f32[8,128], index: 5, kind: output, shape index: {}]  }
   0x1   :  { %11 = vsyncpa [#allocation8], 0 }
   0x2   :  { %12 = vsyncpa [#allocation11], 0 }
   0x3   :  { %13 = vsyncpa [#allocation6], 0  ;;  %s573_s18 = smov [#allocation7]   ;;  %s574_s20 = smov [#allocation4]  }
   0x4   :  { %s30_s19 = sshll.u32 %s573_s18, 4  ;;  %s20_s21 = sshll.u32 %s574_s20, 4  ;;  %s31_s19 = int_to_ptr.vmem [resolvable:$true] %s30_s19  ;;  %s21_s21 = int_to_ptr.vmem [resolvable:$true] %s20_s21 }
   0x5   :  { %s455_s24 = scalar_lea.hbm %s693_s1, 128 }
   0x6   :  { %p456_p0 = scmp.ne.s32.totalorder %s693_s1, %s455_s24  ;;  %p459_p1 = scmp.lt.u32.totalorder %s455_s24, %s693_s1 }
   0x8   :  { %p461_p2 = pnand %p459_p1, %p456_p0 }
   0xa   :  { %464 = shalt.err (!%p461_p2)
}
   0xb   :  { %s465_s29 = scalar_lea.vmem %s31_s19, 128  ;;  %p470_p4 = scmp.lt.s32.totalorder %s31_s19, %s31_s19 }
   0xc   :  { %p466_p3 = scmp.ne.s32.totalorder %s31_s19, %s465_s29  ;;  %p471_p5 = scmp.lt.s32.totalorder %s465_s29, %s465_s29 }
   0xe   :  { %p472_p6 = por %p471_p5, %p470_p4 }
  0x10   :  { %p473_p7 = pnand %p472_p6, %p466_p3 }
  0x12   :  { %476 = shalt.err (!%p473_p7)
}
  0x13   :  { %33 = dma.hbm_to_vmem [thread:$0]  %s693_s1, 128, %s31_s19, [#allocation8]  }
  0x14   :  { %s477_s9 = scalar_lea.hbm %s692_s0, 128 }
  0x15   :  { %p478_p8 = scmp.ne.s32.totalorder %s692_s0, %s477_s9  ;;  %p481_p9 = scmp.lt.u32.totalorder %s477_s9, %s692_s0 }
  0x17   :  { %p483_p10 = pnand %p481_p9, %p478_p8 }
  0x19   :  { %486 = shalt.err (!%p483_p10)
}
  0x1a   :  { %s487_s14 = scalar_lea.vmem %s21_s21, 128  ;;  %p492_p12 = scmp.lt.s32.totalorder %s21_s21, %s21_s21 }
  0x1b   :  { %p488_p11 = scmp.ne.s32.totalorder %s21_s21, %s487_s14  ;;  %p493_p13 = scmp.lt.s32.totalorder %s487_s14, %s487_s14 }
  0x1d   :  { %p494_p0 = por %p493_p13, %p492_p12 }
  0x1f   :  { %p495_p1 = pnand %p494_p0, %p488_p11 }
  0x21   :  { %498 = shalt.err (!%p495_p1)
}
  0x22   :  { %23 = dma.hbm_to_vmem [thread:$0]  %s692_s0, 128, %s21_s21, [#allocation5]  }
  0x23   :  { %s575_s16 = smov [#allocation9]   ;;  %s499_s20 = scalar_lea.hbm %s694_s2, 2048 }
  0x24   :  { %s39_s17 = sshll.u32 %s575_s16, 4  ;;  %p500_p2 = scmp.ne.s32.totalorder %s694_s2, %s499_s20  ;;  %s40_s17 = int_to_ptr.vmem [resolvable:$true] %s39_s17 }
  0x25   :  { %p503_p3 = scmp.lt.u32.totalorder %s499_s20, %s694_s2 }
  0x27   :  { %p505_p4 = pnand %p503_p3, %p500_p2 }
  0x29   :  { %508 = shalt.err (!%p505_p4)
}
  0x2a   :  { %s509_s26 = scalar_lea.vmem %s40_s17, 2048  ;;  %p514_p6 = scmp.lt.s32.totalorder %s40_s17, %s40_s17 }
  0x2b   :  { %p510_p5 = scmp.ne.s32.totalorder %s40_s17, %s509_s26  ;;  %p515_p7 = scmp.lt.s32.totalorder %s509_s26, %s509_s26 }
  0x2d   :  { %p516_p8 = por %p515_p7, %p514_p6 }
  0x2f   :  { %p517_p9 = pnand %p516_p8, %p510_p5 }
  0x31   :  { %520 = shalt.err (!%p517_p9)
}
  0x32   :  { %s576_s0 = smov 128   ;;  %s577_s21 = smov 8  }
  0x33   :  { %45 = dma.hbm_to_vmem [thread:$0]  %s694_s2, 2048, %s40_s17, [#allocation8], %s576_s0, %s576_s0, %s577_s21  }
  0x34   :  { %s578_s29 = smov [#allocation10]   ;;  %s521_s8 = scalar_lea.hbm %s695_s3, 2048 }
  0x35   :  { %s51_s30 = sshll.u32 %s578_s29, 4  ;;  %p522_p10 = scmp.ne.s32.totalorder %s695_s3, %s521_s8  ;;  %s52_s30 = int_to_ptr.vmem [resolvable:$true] %s51_s30 }
  0x36   :  { %p525_p11 = scmp.lt.u32.totalorder %s521_s8, %s695_s3 }
  0x38   :  { %p527_p12 = pnand %p525_p11, %p522_p10 }
  0x3a   :  { %530 = shalt.err (!%p527_p12)
}
  0x3b   :  { %s531_s13 = scalar_lea.vmem %s52_s30, 2048  ;;  %p536_p0 = scmp.lt.s32.totalorder %s52_s30, %s52_s30 }
  0x3c   :  { %p532_p13 = scmp.ne.s32.totalorder %s52_s30, %s531_s13  ;;  %p537_p1 = scmp.lt.s32.totalorder %s531_s13, %s531_s13 }
  0x3e   :  { %p538_p2 = por %p537_p1, %p536_p0 }
  0x40   :  { %p539_p3 = pnand %p538_p2, %p532_p13 }
  0x42   :  { %542 = shalt.err (!%p539_p3)
}
  0x43   :  { %57 = dma.hbm_to_vmem [thread:$0]  %s695_s3, 2048, %s52_s30, [#allocation11], %s576_s0, %s576_s0, %s577_s21  }
  0x44   :  { %565 = dma.done.wait [#allocation5], 128  }
  0x45   :  { %566 = vsyncadd [#allocation5], 4294967168 }
  0x46   :  { %567 = dma.done.wait [#allocation8], 2176  }
  0x47   :  { %568 = vsyncadd [#allocation8], 4294965120 }
  0x48   :  { %569 = dma.done.wait [#allocation11], 2048  }
  0x49   :  { %570 = vsyncadd [#allocation11], 4294965248  ;;  %v579_v0 = vmov 0.0|0.0   ;;  %vm580_vm0 = vmmov 0   ;;  %v581_v1 = vmov 0.0   ;;  %v170_v2 = vld [vmem:[#allocation10] sm:$0xff]  ;;  %v264_v52 = vlaneseq }
  0x4a   :  { %421 = vmatprep.subr.bf16.mxu1 %v579_v0  ;;  %397 = vmatprep.subr.bf16.mxu0 %v579_v0  ;;  %v171_v3 = vld [vmem:[#allocation10 + $0x8] sm:$0xff]  ;;  %v80_v4 = vld [vmem:[#allocation9] sm:$0xff]  ;;  %v172_v7 = vld [vmem:[#allocation10 + $0x10] sm:$0xff]  ;;  %s582_s15 = smov [#allocation12]  }
  0x4b   :  { %394 = vmatprep.mubr.msk.f32.mxu1 %vm580_vm0, %v581_v1  ;;  %359 = vmatprep.mubr.msk.f32.mxu0 %vm580_vm0, %v581_v1  ;;  %v422_v5 = vpack.c.bf16 %v171_v3, %v170_v2  ;;  %v81_v6 = vld [vmem:[#allocation9 + $0x8] sm:$0xff]  ;;  %v173_v8 = vld [vmem:[#allocation10 + $0x18] sm:$0xff]  ;;  %v82_v10 = vld [vmem:[#allocation9 + $0x10] sm:$0xff]  ;;  %v265_v53 = vshrl.u32 %v264_v52, 7  ;;  %s282_s16 = sshll.u32 %s582_s15, 4  ;;  %s283_s16 = int_to_ptr.vmem [resolvable:$true] %s282_s16 }
  0x4c   :  { %v398_v9 = vpack.c.bf16 %v81_v6, %v80_v4  ;;  %v83_v11 = vld [vmem:[#allocation9 + $0x18] sm:$0xff]  ;;  %v425_v12 = vpack.c.bf16 %v173_v8, %v172_v7  ;;  %v174_v14 = vld [vmem:[#allocation10 + $0x20] sm:$0xff]  ;;  %v175_v15 = vld [vmem:[#allocation10 + $0x28] sm:$0xff]  ;;  %s543_s17 = scalar_lea.vmem %s283_s16, 128  ;;  %p548_p5 = scmp.lt.s32.totalorder %s283_s16, %s283_s16 }
  0x4d   :  { %423 = vmatpush3.bf16.msra.mxu1 %v422_v5  ;;  %v401_v13 = vpack.c.bf16 %v83_v11, %v82_v10  ;;  %v84_v16 = vld [vmem:[#allocation9 + $0x20] sm:$0xff]  ;;  %v85_v17 = vld [vmem:[#allocation9 + $0x28] sm:$0xff]  ;;  %v428_v18 = vpack.c.bf16 %v175_v15, %v174_v14  ;;  %v176_v20 = vld [vmem:[#allocation10 + $0x30] sm:$0xff]  ;;  %v266_v54 = vsub.s32 1, %v265_v53  ;;  %v272_v57 = vsub.s32 0, %v265_v53  ;;  %p544_p4 = scmp.ne.s32.totalorder %s283_s16, %s543_s17  ;;  %p549_p6 = scmp.lt.s32.totalorder %s543_s17, %s543_s17 }
  0x4e   :  { %399 = vmatpush3.bf16.msra.mxu0 %v398_v9  ;;  %424 = vmatprep.subr.bf16.mxu1 %v579_v0  ;;  %v404_v19 = vpack.c.bf16 %v85_v17, %v84_v16  ;;  %v177_v21 = vld [vmem:[#allocation10 + $0x38] sm:$0xff]  ;;  %v86_v22 = vld [vmem:[#allocation9 + $0x30] sm:$0xff]  ;;  %v178_v26 = vld [vmem:[#allocation10 + $0x40] sm:$0xff] }
  0x4f   :  { %400 = vmatprep.subr.bf16.mxu0 %v579_v0  ;;  %v87_v23 = vld [vmem:[#allocation9 + $0x38] sm:$0xff]  ;;  %v431_v24 = vpack.c.bf16 %v177_v21, %v176_v20  ;;  %v179_v27 = vld [vmem:[#allocation10 + $0x48] sm:$0xff]  ;;  %v88_v28 = vld [vmem:[#allocation9 + $0x40] sm:$0xff]  ;;  %p550_p7 = por %p549_p6, %p548_p5 }
  0x50   :  { %v407_v25 = vpack.c.bf16 %v87_v23, %v86_v22  ;;  %v89_v29 = vld [vmem:[#allocation9 + $0x48] sm:$0xff]  ;;  %v434_v30 = vpack.c.bf16 %v179_v27, %v178_v26  ;;  %v180_v32 = vld [vmem:[#allocation10 + $0x50] sm:$0xff]  ;;  %v181_v33 = vld [vmem:[#allocation10 + $0x58] sm:$0xff] }
  0x51   :  { %426 = vmatpush3.bf16.msra.mxu1 %v425_v12  ;;  %v410_v31 = vpack.c.bf16 %v89_v29, %v88_v28  ;;  %v90_v34 = vld [vmem:[#allocation9 + $0x50] sm:$0xff]  ;;  %v91_v35 = vld [vmem:[#allocation9 + $0x58] sm:$0xff]  ;;  %v437_v36 = vpack.c.bf16 %v181_v33, %v180_v32  ;;  %v182_v38 = vld [vmem:[#allocation10 + $0x60] sm:$0xff]  ;;  %p551_p8 = pnand %p550_p7, %p544_p4 }
  0x52   :  { %402 = vmatpush3.bf16.msra.mxu0 %v401_v13  ;;  %427 = vmatprep.subr.bf16.mxu1 %v579_v0  ;;  %v413_v37 = vpack.c.bf16 %v91_v35, %v90_v34  ;;  %v183_v39 = vld [vmem:[#allocation10 + $0x68] sm:$0xff]  ;;  %v92_v40 = vld [vmem:[#allocation9 + $0x60] sm:$0xff]  ;;  %v184_v44 = vld [vmem:[#allocation10 + $0x70] sm:$0xff] }
  0x53   :  { %403 = vmatprep.subr.bf16.mxu0 %v579_v0  ;;  %v93_v41 = vld [vmem:[#allocation9 + $0x68] sm:$0xff]  ;;  %v440_v42 = vpack.c.bf16 %v183_v39, %v182_v38  ;;  %v185_v45 = vld [vmem:[#allocation10 + $0x78] sm:$0xff]  ;;  %v94_v46 = vld [vmem:[#allocation9 + $0x70] sm:$0xff] }
  0x54   :  { %v416_v43 = vpack.c.bf16 %v93_v41, %v92_v40  ;;  %v95_v47 = vld [vmem:[#allocation9 + $0x78] sm:$0xff]  ;;  %v443_v48 = vpack.c.bf16 %v185_v45, %v184_v44  ;;  %v79_v51 = vld [vmem:[#allocation4] sm:$0xff] }
  0x55   :  { %429 = vmatpush3.bf16.msra.mxu1 %v428_v18  ;;  %v419_v49 = vpack.c.bf16 %v95_v47, %v94_v46  ;;  %v169_v50 = vld [vmem:[#allocation7] sm:$0xff]  ;;  %v261_v55 = vld [vmem:[%s696_s4] sm:$0x3] }
  0x56   :  { %405 = vmatpush3.bf16.msra.mxu0 %v404_v19  ;;  %430 = vmatprep.subr.bf16.mxu1 %v579_v0  ;;  %v267_v56 = vrot.slane %v261_v55, %v266_v54  ;;  %v273_v61 = vrot.slane %v261_v55, %v272_v57 }
  0x57   :  { %406 = vmatprep.subr.bf16.mxu0 %v579_v0 }
  0x59   :  { %432 = vmatpush3.bf16.msra.mxu1 %v431_v24 }
  0x5a   :  { %408 = vmatpush3.bf16.msra.mxu0 %v407_v25  ;;  %433 = vmatprep.subr.bf16.mxu1 %v579_v0 }
  0x5b   :  { %409 = vmatprep.subr.bf16.mxu0 %v579_v0 }
  0x5d   :  { %435 = vmatpush3.bf16.msra.mxu1 %v434_v30 }
  0x5e   :  { %411 = vmatpush3.bf16.msra.mxu0 %v410_v31  ;;  %436 = vmatprep.subr.bf16.mxu1 %v579_v0 }
  0x5f   :  { %412 = vmatprep.subr.bf16.mxu0 %v579_v0 }
  0x61   :  { %438 = vmatpush3.bf16.msra.mxu1 %v437_v36 }
  0x62   :  { %414 = vmatpush3.bf16.msra.mxu0 %v413_v37  ;;  %439 = vmatprep.subr.bf16.mxu1 %v579_v0 }
  0x63   :  { %415 = vmatprep.subr.bf16.mxu0 %v579_v0 }
  0x65   :  { %441 = vmatpush3.bf16.msra.mxu1 %v440_v42 }
  0x66   :  { %417 = vmatpush3.bf16.msra.mxu0 %v416_v43  ;;  %442 = vmatprep.subr.bf16.mxu1 %v579_v0 }
  0x67   :  { %418 = vmatprep.subr.bf16.mxu0 %v579_v0 }
  0x69   :  { %444 = vmatpush3.bf16.msra.mxu1 %v443_v48 }
  0x6a   :  { %420 = vmatpush3.bf16.msra.mxu0 %v419_v49 }
  0x6c   :  { %395 = vmatmul.mubr.f32.vlgmr.msra.gmra.mrb[0].mxu1 %v169_v50 }
  0x6d   :  { %360 = vmatmul.mubr.f32.vlgmr.msra.gmra.mrb[0].mxu0 %v79_v51 }
 0x13f   :  { %v252_v58 = vpop.f32.mrb[0].mxu1 }
 0x140   :  { %v268_v59 = vmul.f32 %v267_v56, %v252_v58  ;;  %v162_v60 = vpop.f32.mrb[0].mxu0  ;;  %v396_v62 = vpop.f32.mrb[1].mxu1 }
 0x141   :  { %v361_v63 = vpop.f32.mrb[1].mxu0 }
 0x142   :  { %v269_v0 = vadd.f32 %v268_v59, %v162_v60 }
 0x144   :  { %v274_v1 = vadd.f32 %v273_v61, %v269_v0 }
 0x146   :  { %275 = vst [vmem:[#allocation12] sm:$0xff] %v274_v1 }
 0x147   :  { %554 = shalt.err (!%p551_p8)
}
 0x148   :  { %s555_s19 = scalar_lea.hbm %s697_s5, 128 }
 0x149   :  { %p556_p9 = scmp.ne.s32.totalorder %s697_s5, %s555_s19  ;;  %p559_p10 = scmp.lt.u32.totalorder %s555_s19, %s697_s5 }
 0x14b   :  { %p561_p11 = pnand %p559_p10, %p556_p9 }
 0x14d   :  { %564 = shalt.err (!%p561_p11)
}
 0x14e   :  { %285 = dma.vmem_to_hbm [thread:$0]  %s283_s16, 128, %s697_s5, [#allocation6]  }
 0x14f   :  { %571 = dma.done.wait [#allocation6], 128  }
 0x150   :  { %572 = vsyncadd [#allocation6], 4294967168 }
 0x151   :  { %289 = vsyncpa [#allocation5], 1 }
 0x152   :  { %290 = vsyncpa [#allocation8], 1 }
 0x153   :  { %291 = vsyncpa [#allocation11], 1 }
 0x154   :  { %292 = vsyncpa [#allocation6], 1 }

</bundles_post_ra>
